<compile_context>
chip_gen: v7x
topology: tpu7x:2x2x1
jax: 0.10.0
libtpu: 0.0.40
codegen_flags: <defaults>
</compile_context>

<pallas_src>
import math
import numpy as np

import jax
import jax.numpy as jnp
from jax import lax
from jax.experimental import pallas as pl
from jax.experimental.pallas import tpu as pltpu


def _i32(v):
    """uint32 literal -> Python int with the same int32 bit pattern."""
    v &= 0xFFFFFFFF
    return v - (1 << 32) if v >= (1 << 31) else v


# lowbias32 hash constants (good avalanche on sequential counters).
_H_M1 = _i32(0x7FEB352D)
_H_M2 = _i32(0x846CA68B)
_H_GOLD = _i32(0x9E3779B9)


def _srl(x, k):
    """Logical right shift for int32 arrays (arithmetic shift + mask)."""
    return (x >> k) & ((1 << (32 - k)) - 1)


def _plan_spatial(HW, s_tile_target, n_batch):
    """Plan the spatial tiling.

    Returns (s_tile, n_par, n_sp, S_pad):
      s_tile : 128-lane rows per grid step (multiple of 8, or the full axis)
      n_par  : 2-way 'parallel' split of the tile axis when batch == 1
      n_sp   : sequential ('arbitrary') tiles per (batch, par) pair
      S_pad  : padded row count = n_par * n_sp * s_tile
    """
    S = -(-HW // 128)                       # rows of 128 lanes covering HW
    if S <= s_tile_target:
        s_tile = S                          # full axis -> no (8,128) issue
        n_tiles = 1
    else:
        s_tile = max(8, (s_tile_target // 8) * 8)
        n_tiles = -(-S // s_tile)
    n_par = 2 if (n_batch == 1 and n_tiles >= 2) else 1
    if n_tiles % n_par:
        n_tiles += 1                        # pad to an even number of tiles
    n_sp = n_tiles // n_par
    S_pad = n_par * n_sp * s_tile
    return s_tile, n_par, n_sp, S_pad


def _make_srflow_kernel(*, C, s_tile, n_sp, n_tiles, HW, quant, df,
                        add_gt_noise, needs_mask):
    """Bake the static dequantization / tiling constants into the kernel."""
    inv_df = float(1.0 / df)
    per_tile = s_tile * 128
    noise_a = float(1.0 / (quant * float(1 << 24)))   # u24*a - b == (U[0,1)-0.5)/quant
    noise_b = float(0.5 / quant)

    def kernel(seed_ref, gt_ref, *out_refs):
        # seed_ref : SMEM (1,) int32 (scalar prefetch)
        # gt_ref   : (C, s_tile, 128) f32 VMEM tile
        # outputs  : [z_ref (C, s_tile, 128)] only when add_gt_noise, then
        #            nll_ref (1, 128) per-lane partial-sum accumulator block
        if add_gt_noise:
            z_ref, nll_ref = out_refs
        else:
            (nll_ref,) = out_refs

        b = pl.program_id(0)
        p = pl.program_id(1)
        sp = pl.program_id(2)
        tile_idx = p * n_sp + sp                       # global spatial tile index

        if add_gt_noise or needs_mask:
            row = lax.broadcasted_iota(jnp.int32, (s_tile, 128), 0)
            col = lax.broadcasted_iota(jnp.int32, (s_tile, 128), 1)

        if add_gt_noise:
            elem = row * 128 + col                     # element offset in this tile
            seed_mix = seed_ref[0] * _H_GOLD           # wrapping int32 scalar

        x_norms = None
        for c in range(C):                             # static unroll, C is small
            z_c = gt_ref[c]                            # (s_tile, 128)
            if add_gt_noise:
                # Counter-based hash -> U[0,1); portable (HW + interpret mode),
                # no extra HBM noise stream.
                x = elem + ((b * C + c) * n_tiles + tile_idx) * per_tile + seed_mix
                x = (x ^ _srl(x, 16)) * _H_M1
                x = (x ^ _srl(x, 15)) * _H_M2
                x = x ^ _srl(x, 16)
                u24 = _srl(x, 8).astype(jnp.float32)   # [0, 2^24)
                z_c = z_c + (u24 * noise_a - noise_b)  # + (U[0,1) - 0.5)/quant
                z_ref[c] = z_c
            sq = z_c * z_c
            x_norms = sq if x_norms is None else x_norms + sq

        # Only the data-dependent log term is accumulated here, per lane.
        logterm = jnp.log(1.0 + x_norms * inv_df)
        if needs_mask:
            gflat = (tile_idx * s_tile + row) * 128 + col
            logterm = jnp.where(gflat < HW, logterm, 0.0)
        part = jnp.sum(logterm, axis=0, keepdims=True)  # (1, 128) sublane reduce

        @pl.when(sp == 0)
        def _init():
            nll_ref[...] = jnp.zeros_like(nll_ref)

        nll_ref[...] = nll_ref[...] + part

    return kernel


def srflownet_normal_flow(gt, lr=None, *, seed=0, quant=255, df=20,
                          add_gt_noise=True, s_tile_target=1024,
                          donate_gt=False):
    """Pallas implementation of SRFlowNet.forward(gt=gt, lr=lr, reverse=False).

    Returns (z, nll, logdet) with shapes ((N,C,H,W), (N,), (N,)), matching the
    PyTorch module (z is the dequantized gt; the flow network itself is
    TODO(synk), see module docstring).

    s_tile_target: spatial rows (of 128 lanes) per grid step; 1024 keeps the
    double-buffered footprint ~6 MiB (fits v5e's 16 MiB scoped default); on
    v7x pass 2048 to amortize per-step overhead against the 3.2 TB/s HBM.
    donate_gt: alias gt into the z output (only safe if the caller does not
    reuse gt afterwards).
    """
    del lr  # TODO(synk): RRDBNet / FlowUpsamplerNet sources not provided; treated as identity with zero extra logdet.
    gt = jnp.asarray(gt, jnp.float32)
    N, C, H, W = gt.shape
    HW = H * W
    pixels = HW                                        # thops.pixels(gt)

    s_tile, n_par, n_sp, S_pad = _plan_spatial(HW, s_tile_target, N)
    n_tiles = n_par * n_sp
    HW_pad = S_pad * 128
    needs_mask = (HW_pad != HW)

    # lane-dense layout (N, C, S_pad, 128); zero-pad awkward H*W and mask it
    # out of the likelihood sum inside the kernel.
    gt_flat = gt.reshape(N, C, HW)
    if needs_mask:
        gt_flat = jnp.pad(gt_flat, ((0, 0), (0, 0), (0, HW_pad - HW)))
    gt_l = gt_flat.reshape(N, C, S_pad, 128)

    seed_arr = jnp.asarray([seed], dtype=jnp.int32)

    kernel = _make_srflow_kernel(C=C, s_tile=s_tile, n_sp=n_sp, n_tiles=n_tiles,
                                 HW=HW, quant=quant, df=df,
                                 add_gt_noise=add_gt_noise,
                                 needs_mask=needs_mask)

    def _img_index(b, p, sp, seed_ref):
        return (b, 0, p * n_sp + sp, 0)

    def _nll_index(b, p, sp, seed_ref):
        return (b, p, 0, 0)

    gt_spec = pl.BlockSpec((None, C, s_tile, 128), _img_index)
    nll_spec = pl.BlockSpec((None, None, 1, 128), _nll_index)
    nll_shape = jax.ShapeDtypeStruct((N, n_par, 1, 128), jnp.float32)

    if add_gt_noise:
        z_spec = pl.BlockSpec((None, C, s_tile, 128), _img_index)
        out_shape = (jax.ShapeDtypeStruct((N, C, S_pad, 128), jnp.float32),
                     nll_shape)
        out_specs = [z_spec, nll_spec]
        # operand 0 is the prefetched seed, operand 1 is gt_l -> output 0 (z)
        io_aliases = {1: 0} if donate_gt else {}
    else:
        # Fast path: z is bit-identical to gt, so do not write it at all
        # (halves HBM traffic); only the per-lane partial sums are emitted.
        out_shape = (nll_shape,)
        out_specs = [nll_spec]
        io_aliases = {}

    res = pl.pallas_call(
        kernel,
        out_shape=out_shape,
        grid_spec=pltpu.PrefetchScalarGridSpec(
            num_scalar_prefetch=1,
            grid=(N, n_par, n_sp),
            in_specs=[gt_spec],
            out_specs=out_specs,
        ),
        compiler_params=pltpu.CompilerParams(
            dimension_semantics=("parallel", "parallel", "arbitrary"),
            vmem_limit_bytes=32 * 1024 * 1024),
        input_output_aliases=io_aliases,
    )(seed_arr, gt_l)

    if add_gt_noise:
        z_l, nll_part = res
        z_flat = z_l.reshape(N, C, HW_pad)
        if needs_mask:
            z_flat = z_flat[:, :, :HW]
        z = z_flat.reshape(N, C, H, W)
    else:
        (nll_part,) = res
        z = gt

    # Finalize the Student-T log-prob once (constants folded out of the kernel).
    norm_const = (math.lgamma(0.5 * (df + C)) - math.lgamma(0.5 * df)
                  - 0.5 * C * math.log(math.pi * df))
    coef = 0.5 * (df + C)
    acc = jnp.sum(nll_part, axis=(1, 2, 3))            # (N,) sum of log(1+|z|^2/df)
    logp = norm_const * pixels - coef * acc
    logdet_const = float(-np.log(quant) * pixels) if add_gt_noise else 0.0
    logdet = jnp.full((N,), logdet_const, dtype=jnp.float32)
    nll = -(logdet + logp) / float(np.log(2.0) * pixels)
    return z, nll.astype(jnp.float32), logdet


def _reference_from_z(z, quant=255, df=20, add_gt_noise=True):
    """Numpy reference of the nll / logdet math, evaluated on the kernel's own z."""
    z = np.asarray(z, np.float64)
    N, C, H, W = z.shape
    pixels = H * W
    d = C
    norm_const = (math.lgamma(0.5 * (df + d)) - math.lgamma(0.5 * df)
                  - 0.5 * d * math.log(math.pi * df))
    x_norms = np.sum(z ** 2, axis=1)                       # (N,H,W)
    likelihood = norm_const - 0.5 * (df + d) * np.log(1 + x_norms / df)
    logp = likelihood.sum(axis=(1, 2))                     # (N,)
    logdet = np.full((N,), -np.log(quant) * pixels if add_gt_noise else 0.0)
    nll = -(logdet + logp) / (np.log(2.0) * pixels)
    return nll, logdet


if __name__ == "__main__":
    key = jax.random.PRNGKey(0)
    k_gt, k_lr, k_gt2 = jax.random.split(key, 3)

    # --- Test 1: canonical small shapes, add_gt_noise=True --------------------
    N, C, H, W = 2, 3, 16, 16
    gt = jax.random.uniform(k_gt, (N, C, H, W), dtype=jnp.float32)
    lr = jax.random.uniform(k_lr, (N, C, H // 4, W // 4), dtype=jnp.float32)

    z, nll, logdet = srflownet_normal_flow(gt, lr, seed=1234, quant=255, df=20,
                                           add_gt_noise=True)
    jax.block_until_ready((z, nll, logdet))

    z_np, gt_np = np.array(z), np.array(gt)
    diff = z_np - gt_np
    assert np.all(np.abs(diff) <= 0.5 / 255 + 1e-6), "noise out of range"
    assert np.std(diff) > 1e-6, "noise appears to be zero"
    nll_ref, logdet_ref = _reference_from_z(z_np, quant=255, df=20, add_gt_noise=True)
    assert np.allclose(np.array(nll), nll_ref, rtol=1e-4, atol=5e-4), "nll mismatch"
    assert np.allclose(np.array(logdet), logdet_ref, rtol=1e-6, atol=1e-5), "logdet mismatch"

    # --- Test 2: add_gt_noise=False fast path (no z output stream) ------------
    z2, nll2, logdet2 = srflownet_normal_flow(gt, lr, seed=0, quant=255, df=20,
                                              add_gt_noise=False)
    jax.block_until_ready((z2, nll2, logdet2))
    assert np.array_equal(np.array(z2), gt_np), "z should equal gt without noise"
    nll2_ref, logdet2_ref = _reference_from_z(gt_np, quant=255, df=20, add_gt_noise=False)
    assert np.allclose(np.array(nll2), nll2_ref, rtol=1e-4, atol=5e-4), "nll mismatch (no noise)"
    assert np.allclose(np.array(logdet2), logdet2_ref, atol=1e-6), "logdet mismatch (no noise)"

    # --- Test 3: non-divisible H*W -> tiling + padding + mask + 2-way split ---
    N3, C3, H3, W3 = 1, 3, 32, 40            # H*W = 1280: 10 lane-rows, tiled by 8
    gt3 = jax.random.uniform(k_gt2, (N3, C3, H3, W3), dtype=jnp.float32)
    z3, nll3, logdet3 = srflownet_normal_flow(gt3, None, seed=7, quant=255, df=20,
                                              add_gt_noise=True, s_tile_target=8)
    jax.block_until_ready((z3, nll3, logdet3))
    z3_np, gt3_np = np.array(z3), np.array(gt3)
    d3 = z3_np - gt3_np
    assert np.all(np.abs(d3) <= 0.5 / 255 + 1e-6), "noise out of range (tiled)"
    assert np.std(d3) > 1e-6, "noise appears to be zero (tiled)"
    nll3_ref, logdet3_ref = _reference_from_z(z3_np, quant=255, df=20, add_gt_noise=True)
    assert np.allclose(np.array(nll3), nll3_ref, rtol=1e-4, atol=5e-4), "nll mismatch (tiled)"
    assert np.allclose(np.array(logdet3), logdet3_ref, rtol=1e-6, atol=1e-5), "logdet mismatch (tiled)"

    print("KERNEL_OK")
</pallas_src>

<mosaic_0001>
module attributes {stable_mosaic.version = 11 : i64} {
  func.func @kernel(%arg0: i32, %arg1: i32, %arg2: i32, %arg3: memref<1xi32, #tpu.memory_space<smem>>, %arg4: memref<1x3x2x128xf32, #tpu.memory_space<vmem>>, %arg5: memref<1x3x2x128xf32, #tpu.memory_space<vmem>>, %arg6: memref<1x1x1x128xf32, #tpu.memory_space<vmem>>) attributes {dimension_semantics = [#tpu.dimension_semantics<parallel>, #tpu.dimension_semantics<parallel>, #tpu.dimension_semantics<arbitrary>], iteration_bounds = array<i64: 2, 1, 1>, scalar_prefetch = 1 : i64, scratch_operands = 0 : i64, tpu.core_type = #tpu.core_type<tc>, window_params = [{transform_indices = @transform_0, window_bounds = array<i64: 1, 3, 2, 128>}, {transform_indices = @transform_1, window_bounds = array<i64: 1, 3, 2, 128>}, {transform_indices = @transform_2, window_bounds = array<i64: 1, 1, 1, 128>}]} {
    %c1_i32 = arith.constant 1 : i32
    %0 = arith.muli %arg1, %c1_i32 : i32
    %1 = arith.addi %0, %arg2 : i32
    %2 = tpu.iota {dimensions = array<i32: 0>} : vector<2x128xi32>
    %3 = tpu.iota {dimensions = array<i32: 1>} : vector<2x128xi32>
    %c128_i32 = arith.constant 128 : i32
    %4 = vector.broadcast %c128_i32 : i32 to vector<2x128xi32>
    %5 = arith.muli %2, %4 : vector<2x128xi32>
    %6 = arith.addi %5, %3 : vector<2x128xi32>
    %c0 = arith.constant 0 : index
    %7 = memref.load %arg3[%c0] : memref<1xi32, #tpu.memory_space<smem>>
    %c-1640531527_i32 = arith.constant -1640531527 : i32
    %8 = arith.muli %7, %c-1640531527_i32 : i32
    %c0_0 = arith.constant 0 : index
    %c0_1 = arith.constant 0 : index
    %c0_2 = arith.constant 0 : index
    %c0_3 = arith.constant 0 : index
    %9 = vector.load %arg4[%c0_0, %c0_1, %c0_2, %c0_3] : memref<1x3x2x128xf32, #tpu.memory_space<vmem>>, vector<1x1x2x128xf32>
    %10 = vector.shape_cast %9 : vector<1x1x2x128xf32> to vector<2x128xf32>
    %c3_i32 = arith.constant 3 : i32
    %11 = arith.muli %arg0, %c3_i32 : i32
    %c0_i32 = arith.constant 0 : i32
    %12 = arith.addi %11, %c0_i32 : i32
    %c1_i32_4 = arith.constant 1 : i32
    %13 = arith.muli %12, %c1_i32_4 : i32
    %14 = arith.addi %13, %1 : i32
    %c256_i32 = arith.constant 256 : i32
    %15 = arith.muli %14, %c256_i32 : i32
    %16 = vector.broadcast %15 : i32 to vector<2x128xi32>
    %17 = arith.addi %6, %16 : vector<2x128xi32>
    %18 = vector.broadcast %8 : i32 to vector<2x128xi32>
    %19 = arith.addi %17, %18 : vector<2x128xi32>
    %c16_i32 = arith.constant 16 : i32
    %20 = vector.broadcast %c16_i32 : i32 to vector<2x128xi32>
    %21 = arith.shrsi %19, %20 : vector<2x128xi32>
    %c65535_i32 = arith.constant 65535 : i32
    %22 = vector.broadcast %c65535_i32 : i32 to vector<2x128xi32>
    %23 = arith.andi %21, %22 : vector<2x128xi32>
    %24 = arith.xori %19, %23 : vector<2x128xi32>
    %c2146121005_i32 = arith.constant 2146121005 : i32
    %25 = vector.broadcast %c2146121005_i32 : i32 to vector<2x128xi32>
    %26 = arith.muli %24, %25 : vector<2x128xi32>
    %c15_i32 = arith.constant 15 : i32
    %27 = vector.broadcast %c15_i32 : i32 to vector<2x128xi32>
    %28 = arith.shrsi %26, %27 : vector<2x128xi32>
    %c131071_i32 = arith.constant 131071 : i32
    %29 = vector.broadcast %c131071_i32 : i32 to vector<2x128xi32>
    %30 = arith.andi %28, %29 : vector<2x128xi32>
    %31 = arith.xori %26, %30 : vector<2x128xi32>
    %c-2073254261_i32 = arith.constant -2073254261 : i32
    %32 = vector.broadcast %c-2073254261_i32 : i32 to vector<2x128xi32>
    %33 = arith.muli %31, %32 : vector<2x128xi32>
    %c16_i32_5 = arith.constant 16 : i32
    %34 = vector.broadcast %c16_i32_5 : i32 to vector<2x128xi32>
    %35 = arith.shrsi %33, %34 : vector<2x128xi32>
    %c65535_i32_6 = arith.constant 65535 : i32
    %36 = vector.broadcast %c65535_i32_6 : i32 to vector<2x128xi32>
    %37 = arith.andi %35, %36 : vector<2x128xi32>
    %38 = arith.xori %33, %37 : vector<2x128xi32>
    %c8_i32 = arith.constant 8 : i32
    %39 = vector.broadcast %c8_i32 : i32 to vector<2x128xi32>
    %40 = arith.shrsi %38, %39 : vector<2x128xi32>
    %c16777215_i32 = arith.constant 16777215 : i32
    %41 = vector.broadcast %c16777215_i32 : i32 to vector<2x128xi32>
    %42 = arith.andi %40, %41 : vector<2x128xi32>
    %43 = arith.sitofp %42 : vector<2x128xi32> to vector<2x128xf32>
    %cst = arith.constant 2.33743719E-10 : f32
    %44 = vector.broadcast %cst : f32 to vector<2x128xf32>
    %45 = arith.mulf %43, %44 : vector<2x128xf32>
    %cst_7 = arith.constant 0.00196078443 : f32
    %46 = vector.broadcast %cst_7 : f32 to vector<2x128xf32>
    %47 = arith.subf %45, %46 : vector<2x128xf32>
    %48 = arith.addf %10, %47 : vector<2x128xf32>
    %c0_8 = arith.constant 0 : index
    %c0_9 = arith.constant 0 : index
    %c0_10 = arith.constant 0 : index
    %c0_11 = arith.constant 0 : index
    %49 = vector.load %arg5[%c0_8, %c0_9, %c0_10, %c0_11] : memref<1x3x2x128xf32, #tpu.memory_space<vmem>>, vector<1x1x2x128xf32>
    %50 = vector.shape_cast %49 : vector<1x1x2x128xf32> to vector<2x128xf32>
    %51 = vector.shape_cast %48 : vector<2x128xf32> to vector<1x1x2x128xf32>
    tpu.vector_store %arg5[%c0_8, %c0_9, %c0_10, %c0_11], %51 {strides = array<i32>} : memref<1x3x2x128xf32, #tpu.memory_space<vmem>>, vector<1x1x2x128xf32>,
    %52 = arith.mulf %48, %48 : vector<2x128xf32>
    %c0_12 = arith.constant 0 : index
    %c1 = arith.constant 1 : index
    %c0_13 = arith.constant 0 : index
    %c0_14 = arith.constant 0 : index
    %53 = vector.load %arg4[%c0_12, %c1, %c0_13, %c0_14] : memref<1x3x2x128xf32, #tpu.memory_space<vmem>>, vector<1x1x2x128xf32>
    %54 = vector.shape_cast %53 : vector<1x1x2x128xf32> to vector<2x128xf32>
    %c3_i32_15 = arith.constant 3 : i32
    %55 = arith.muli %arg0, %c3_i32_15 : i32
    %c1_i32_16 = arith.constant 1 : i32
    %56 = arith.addi %55, %c1_i32_16 : i32
    %c1_i32_17 = arith.constant 1 : i32
    %57 = arith.muli %56, %c1_i32_17 : i32
    %58 = arith.addi %57, %1 : i32
    %c256_i32_18 = arith.constant 256 : i32
    %59 = arith.muli %58, %c256_i32_18 : i32
    %60 = vector.broadcast %59 : i32 to vector<2x128xi32>
    %61 = arith.addi %6, %60 : vector<2x128xi32>
    %62 = vector.broadcast %8 : i32 to vector<2x128xi32>
    %63 = arith.addi %61, %62 : vector<2x128xi32>
    %c16_i32_19 = arith.constant 16 : i32
    %64 = vector.broadcast %c16_i32_19 : i32 to vector<2x128xi32>
    %65 = arith.shrsi %63, %64 : vector<2x128xi32>
    %c65535_i32_20 = arith.constant 65535 : i32
    %66 = vector.broadcast %c65535_i32_20 : i32 to vector<2x128xi32>
    %67 = arith.andi %65, %66 : vector<2x128xi32>
    %68 = arith.xori %63, %67 : vector<2x128xi32>
    %c2146121005_i32_21 = arith.constant 2146121005 : i32
    %69 = vector.broadcast %c2146121005_i32_21 : i32 to vector<2x128xi32>
    %70 = arith.muli %68, %69 : vector<2x128xi32>
    %c15_i32_22 = arith.constant 15 : i32
    %71 = vector.broadcast %c15_i32_22 : i32 to vector<2x128xi32>
    %72 = arith.shrsi %70, %71 : vector<2x128xi32>
    %c131071_i32_23 = arith.constant 131071 : i32
    %73 = vector.broadcast %c131071_i32_23 : i32 to vector<2x128xi32>
    %74 = arith.andi %72, %73 : vector<2x128xi32>
    %75 = arith.xori %70, %74 : vector<2x128xi32>
    %c-2073254261_i32_24 = arith.constant -2073254261 : i32
    %76 = vector.broadcast %c-2073254261_i32_24 : i32 to vector<2x128xi32>
    %77 = arith.muli %75, %76 : vector<2x128xi32>
    %c16_i32_25 = arith.constant 16 : i32
    %78 = vector.broadcast %c16_i32_25 : i32 to vector<2x128xi32>
    %79 = arith.shrsi %77, %78 : vector<2x128xi32>
    %c65535_i32_26 = arith.constant 65535 : i32
    %80 = vector.broadcast %c65535_i32_26 : i32 to vector<2x128xi32>
    %81 = arith.andi %79, %80 : vector<2x128xi32>
    %82 = arith.xori %77, %81 : vector<2x128xi32>
    %c8_i32_27 = arith.constant 8 : i32
    %83 = vector.broadcast %c8_i32_27 : i32 to vector<2x128xi32>
    %84 = arith.shrsi %82, %83 : vector<2x128xi32>
    %c16777215_i32_28 = arith.constant 16777215 : i32
    %85 = vector.broadcast %c16777215_i32_28 : i32 to vector<2x128xi32>
    %86 = arith.andi %84, %85 : vector<2x128xi32>
    %87 = arith.sitofp %86 : vector<2x128xi32> to vector<2x128xf32>
    %cst_29 = arith.constant 2.33743719E-10 : f32
    %88 = vector.broadcast %cst_29 : f32 to vector<2x128xf32>
    %89 = arith.mulf %87, %88 : vector<2x128xf32>
    %cst_30 = arith.constant 0.00196078443 : f32
    %90 = vector.broadcast %cst_30 : f32 to vector<2x128xf32>
    %91 = arith.subf %89, %90 : vector<2x128xf32>
    %92 = arith.addf %54, %91 : vector<2x128xf32>
    %c0_31 = arith.constant 0 : index
    %c1_32 = arith.constant 1 : index
    %c0_33 = arith.constant 0 : index
    %c0_34 = arith.constant 0 : index
    %93 = vector.load %arg5[%c0_31, %c1_32, %c0_33, %c0_34] : memref<1x3x2x128xf32, #tpu.memory_space<vmem>>, vector<1x1x2x128xf32>
    %94 = vector.shape_cast %93 : vector<1x1x2x128xf32> to vector<2x128xf32>
    %95 = vector.shape_cast %92 : vector<2x128xf32> to vector<1x1x2x128xf32>
    tpu.vector_store %arg5[%c0_31, %c1_32, %c0_33, %c0_34], %95 {strides = array<i32>} : memref<1x3x2x128xf32, #tpu.memory_space<vmem>>, vector<1x1x2x128xf32>,
    %96 = arith.mulf %92, %92 : vector<2x128xf32>
    %97 = arith.addf %52, %96 : vector<2x128xf32>
    %c0_35 = arith.constant 0 : index
    %c2 = arith.constant 2 : index
    %c0_36 = arith.constant 0 : index
    %c0_37 = arith.constant 0 : index
    %98 = vector.load %arg4[%c0_35, %c2, %c0_36, %c0_37] : memref<1x3x2x128xf32, #tpu.memory_space<vmem>>, vector<1x1x2x128xf32>
    %99 = vector.shape_cast %98 : vector<1x1x2x128xf32> to vector<2x128xf32>
    %c3_i32_38 = arith.constant 3 : i32
    %100 = arith.muli %arg0, %c3_i32_38 : i32
    %c2_i32 = arith.constant 2 : i32
    %101 = arith.addi %100, %c2_i32 : i32
    %c1_i32_39 = arith.constant 1 : i32
    %102 = arith.muli %101, %c1_i32_39 : i32
    %103 = arith.addi %102, %1 : i32
    %c256_i32_40 = arith.constant 256 : i32
    %104 = arith.muli %103, %c256_i32_40 : i32
    %105 = vector.broadcast %104 : i32 to vector<2x128xi32>
    %106 = arith.addi %6, %105 : vector<2x128xi32>
    %107 = vector.broadcast %8 : i32 to vector<2x128xi32>
    %108 = arith.addi %106, %107 : vector<2x128xi32>
    %c16_i32_41 = arith.constant 16 : i32
    %109 = vector.broadcast %c16_i32_41 : i32 to vector<2x128xi32>
    %110 = arith.shrsi %108, %109 : vector<2x128xi32>
    %c65535_i32_42 = arith.constant 65535 : i32
    %111 = vector.broadcast %c65535_i32_42 : i32 to vector<2x128xi32>
    %112 = arith.andi %110, %111 : vector<2x128xi32>
    %113 = arith.xori %108, %112 : vector<2x128xi32>
    %c2146121005_i32_43 = arith.constant 2146121005 : i32
    %114 = vector.broadcast %c2146121005_i32_43 : i32 to vector<2x128xi32>
    %115 = arith.muli %113, %114 : vector<2x128xi32>
    %c15_i32_44 = arith.constant 15 : i32
    %116 = vector.broadcast %c15_i32_44 : i32 to vector<2x128xi32>
    %117 = arith.shrsi %115, %116 : vector<2x128xi32>
    %c131071_i32_45 = arith.constant 131071 : i32
    %118 = vector.broadcast %c131071_i32_45 : i32 to vector<2x128xi32>
    %119 = arith.andi %117, %118 : vector<2x128xi32>
    %120 = arith.xori %115, %119 : vector<2x128xi32>
    %c-2073254261_i32_46 = arith.constant -2073254261 : i32
    %121 = vector.broadcast %c-2073254261_i32_46 : i32 to vector<2x128xi32>
    %122 = arith.muli %120, %121 : vector<2x128xi32>
    %c16_i32_47 = arith.constant 16 : i32
    %123 = vector.broadcast %c16_i32_47 : i32 to vector<2x128xi32>
    %124 = arith.shrsi %122, %123 : vector<2x128xi32>
    %c65535_i32_48 = arith.constant 65535 : i32
    %125 = vector.broadcast %c65535_i32_48 : i32 to vector<2x128xi32>
    %126 = arith.andi %124, %125 : vector<2x128xi32>
    %127 = arith.xori %122, %126 : vector<2x128xi32>
    %c8_i32_49 = arith.constant 8 : i32
    %128 = vector.broadcast %c8_i32_49 : i32 to vector<2x128xi32>
    %129 = arith.shrsi %127, %128 : vector<2x128xi32>
    %c16777215_i32_50 = arith.constant 16777215 : i32
    %130 = vector.broadcast %c16777215_i32_50 : i32 to vector<2x128xi32>
    %131 = arith.andi %129, %130 : vector<2x128xi32>
    %132 = arith.sitofp %131 : vector<2x128xi32> to vector<2x128xf32>
    %cst_51 = arith.constant 2.33743719E-10 : f32
    %133 = vector.broadcast %cst_51 : f32 to vector<2x128xf32>
    %134 = arith.mulf %132, %133 : vector<2x128xf32>
    %cst_52 = arith.constant 0.00196078443 : f32
    %135 = vector.broadcast %cst_52 : f32 to vector<2x128xf32>
    %136 = arith.subf %134, %135 : vector<2x128xf32>
    %137 = arith.addf %99, %136 : vector<2x128xf32>
    %c0_53 = arith.constant 0 : index
    %c2_54 = arith.constant 2 : index
    %c0_55 = arith.constant 0 : index
    %c0_56 = arith.constant 0 : index
    %138 = vector.load %arg5[%c0_53, %c2_54, %c0_55, %c0_56] : memref<1x3x2x128xf32, #tpu.memory_space<vmem>>, vector<1x1x2x128xf32>
    %139 = vector.shape_cast %138 : vector<1x1x2x128xf32> to vector<2x128xf32>
    %140 = vector.shape_cast %137 : vector<2x128xf32> to vector<1x1x2x128xf32>
    tpu.vector_store %arg5[%c0_53, %c2_54, %c0_55, %c0_56], %140 {strides = array<i32>} : memref<1x3x2x128xf32, #tpu.memory_space<vmem>>, vector<1x1x2x128xf32>,
    %141 = arith.mulf %137, %137 : vector<2x128xf32>
    %142 = arith.addf %97, %141 : vector<2x128xf32>
    %cst_57 = arith.constant 5.000000e-02 : f32
    %143 = vector.broadcast %cst_57 : f32 to vector<2x128xf32>
    %144 = arith.mulf %142, %143 : vector<2x128xf32>
    %cst_58 = arith.constant 1.000000e+00 : f32
    %145 = vector.broadcast %cst_58 : f32 to vector<2x128xf32>
    %146 = arith.addf %145, %144 : vector<2x128xf32>
    %147 = math.log %146 : vector<2x128xf32>
    %cst_59 = arith.constant dense<0.000000e+00> : vector<128xf32>
    %148 = vector.multi_reduction <add>, %147, %cst_59 [0] : vector<2x128xf32> to vector<128xf32>
    %149 = vector.shape_cast %148 : vector<128xf32> to vector<1x128xf32>
    %c0_i32_60 = arith.constant 0 : i32
    %150 = arith.cmpi eq, %arg2, %c0_i32_60 : i32
    %151 = arith.extui %150 : i1 to i32
    %c0_i32_61 = arith.constant 0 : i32
    %152 = arith.cmpi ne, %151, %c0_i32_61 : i32
    scf.if %152 {
      %cst_70 = arith.constant 0.000000e+00 : f32
      %159 = vector.broadcast %cst_70 : f32 to vector<1x128xf32>
      %c0_71 = arith.constant 0 : index
      %c0_72 = arith.constant 0 : index
      %c0_73 = arith.constant 0 : index
      %c0_74 = arith.constant 0 : index
      %160 = vector.load %arg6[%c0_71, %c0_72, %c0_73, %c0_74] : memref<1x1x1x128xf32, #tpu.memory_space<vmem>>, vector<1x1x1x128xf32>
      %161 = vector.shape_cast %160 : vector<1x1x1x128xf32> to vector<1x128xf32>
      %162 = vector.shape_cast %159 : vector<1x128xf32> to vector<1x1x1x128xf32>
      tpu.vector_store %arg6[%c0_71, %c0_72, %c0_73, %c0_74], %162 {strides = array<i32>} : memref<1x1x1x128xf32, #tpu.memory_space<vmem>>, vector<1x1x1x128xf32>,
    } else {
    }
    %c0_62 = arith.constant 0 : index
    %c0_63 = arith.constant 0 : index
    %c0_64 = arith.constant 0 : index
    %c0_65 = arith.constant 0 : index
    %153 = vector.load %arg6[%c0_62, %c0_63, %c0_64, %c0_65] : memref<1x1x1x128xf32, #tpu.memory_space<vmem>>, vector<1x1x1x128xf32>
    %154 = vector.shape_cast %153 : vector<1x1x1x128xf32> to vector<1x128xf32>
    %155 = arith.addf %154, %149 : vector<1x128xf32>
    %c0_66 = arith.constant 0 : index
    %c0_67 = arith.constant 0 : index
    %c0_68 = arith.constant 0 : index
    %c0_69 = arith.constant 0 : index
    %156 = vector.load %arg6[%c0_66, %c0_67, %c0_68, %c0_69] : memref<1x1x1x128xf32, #tpu.memory_space<vmem>>, vector<1x1x1x128xf32>
    %157 = vector.shape_cast %156 : vector<1x1x1x128xf32> to vector<1x128xf32>
    %158 = vector.shape_cast %155 : vector<1x128xf32> to vector<1x1x1x128xf32>
    tpu.vector_store %arg6[%c0_66, %c0_67, %c0_68, %c0_69], %158 {strides = array<i32>} : memref<1x1x1x128xf32, #tpu.memory_space<vmem>>, vector<1x1x1x128xf32>,
    return
  }
  func.func @transform_0(%arg0: i32, %arg1: i32, %arg2: i32, %arg3: memref<1xi32, #tpu.memory_space<smem>>) -> (i32, i32, i32, i32) {
    %c1_i32 = arith.constant 1 : i32
    %0 = arith.muli %arg1, %c1_i32 : i32
    %1 = arith.addi %0, %arg2 : i32
    %c0_i32 = arith.constant 0 : i32
    %c0_i32_0 = arith.constant 0 : i32
    %c0_i32_1 = arith.constant 0 : i32
    return %arg0, %c0_i32, %1, %c0_i32_0 : i32, i32, i32, i32
  }
  func.func @transform_1(%arg0: i32, %arg1: i32, %arg2: i32, %arg3: memref<1xi32, #tpu.memory_space<smem>>) -> (i32, i32, i32, i32) {
    %c1_i32 = arith.constant 1 : i32
    %0 = arith.muli %arg1, %c1_i32 : i32
    %1 = arith.addi %0, %arg2 : i32
    %c0_i32 = arith.constant 0 : i32
    %c0_i32_0 = arith.constant 0 : i32
    %c0_i32_1 = arith.constant 0 : i32
    return %arg0, %c0_i32, %1, %c0_i32_0 : i32, i32, i32, i32
  }
  func.func @transform_2(%arg0: i32, %arg1: i32, %arg2: i32, %arg3: memref<1xi32, #tpu.memory_space<smem>>) -> (i32, i32, i32, i32) {
    %c0_i32 = arith.constant 0 : i32
    %c0_i32_0 = arith.constant 0 : i32
    %c0_i32_1 = arith.constant 0 : i32
    return %arg0, %arg1, %c0_i32, %c0_i32_0 : i32, i32, i32, i32
  }
}

</mosaic_0001>

<bundles_post_ra>
// kernel: tpu_custom_call.1
= control target key start
LH: loop header
LB: loop body
LE: loop exit
PB: predicated region body
PF: predicated region fallthrough
CT: control target
= control target key end

     0   :  { %s989_s0 = inlined_call_operand.<no memory space> [shape: s32[1], index: 0, kind: input, shape index: {}]   ;;  %s990_s1 = inlined_call_operand.hbm [shape: f32[2,3,2,128], index: 1, kind: input, shape index: {}]   ;;  %s991_s2 = inlined_call_operand.hbm [shape: f32[2,3,2,128], index: 2, kind: output, shape index: {0}]   ;;  %s992_s3 = inlined_call_operand.hbm [shape: f32[2,1,1,128], index: 3, kind: output, shape index: {1}]  }
   0x1   :  { %9 = sst [smem:[#allocation3]] %s989_s0 }
   0x2   :  { %10 = vsyncpa [#allocation5], 0 }
   0x3   :  { %12 = vsyncpa [#allocation5 + $0x1], 0 }
   0x4   :  { %13 = vsyncpa [#allocation6], 0 }
   0x5   :  { %15 = vsyncpa [#allocation6 + $0x1], 0 }
   0x6   :  { %16 = vsyncpa [#allocation9], 0 }
   0x7   :  { %18 = vsyncpa [#allocation9 + $0x1], 0  ;;  %s767_s14 = smov 0   ;;  %s769_s15 = smov 0  }
   0x8   :  { %s771_s16 = smov 0   ;;  %s773_s17 = smov 0  }
   0x9   :  { %s775_s18 = smov 0   ;;  %s777_s19 = smov 0  }
   0xa LB: > { %s474_s0 = sadd.s32 4294967295, %s734_s19   ;;  %s475_s20 = sadd.s32 4294967294, %s734_s19   ;;  %s734_s19 = sphi %s777_s19, %s24_s19   ;;  %s730_s18 = sphi %s775_s18, %s1007_s18   ;;  %s726_s17 = sphi %s773_s17, %s1006_s17   ;;  %s722_s16 = sphi %s771_s16, %s1005_s16   ;;  %s718_s15 = sphi %s769_s15, %s1004_s15   ;;  %s714_s14 = sphi %s767_s14, %s1003_s14  }
   0xb   : > { %s43_s21 = sadd.s32 1, %s730_s18  ;;  %s54_s22 = sadd.s32 1, %s722_s16 }
   0xc   : > { %p45_p0 = scmp.ge.s32.totalorder %s43_s21, 2  ;;  %p61_p1 = scmp.ne.s32.totalorder %s722_s16, %s718_s15 }
   0xd   : > { %p62_p2 = scmp.eq.s32.totalorder %s734_s19, 0  ;;  %p67_p3 = scmp.ne.s32.totalorder %s718_s15, %s714_s14 }
   0xe   : > { %s1009_s21 = smov (%p45_p0, %s43_s21), 0  ;;  %p68_p5 = scmp.eq.s32.totalorder %s474_s0, 0 }
   0xf   : > { %p808_p4 = por %p62_p2, %p61_p1  ;;  %s49_s24 = ssub.s32 %s730_s18, %s1009_s21 }
  0x10   : > { %p95_p6 = scmp.eq.s32.totalorder %s474_s0, 1  ;;  %p52_p7 = scmp.eq.s32.totalorder %s49_s24, 0 }
  0x11   : > { %p814_p8 = por %p68_p5, %p67_p3  ;;  %p101_p10 = scmp.eq.s32.totalorder %s475_s20, 1 }
  0x12   : > { %p818_p9 = por %p95_p6, %p61_p1  ;;  %p533_p13 = scmp.lt.s32.totalorder %s734_s19, 2 }
  0x13   : > { %s823_s27 = scalar_select %p52_p7, %s722_s16, %s54_s22  }
  0x14   : > { %s996_s26 = scalar_select %p818_p9, 1, 0 }
  0x15   : > { %p825_p11 = por %p101_p10, %p67_p3  ;;  %s149_s29 = sand.u32 1, %s722_s16  }
  0x16   : > { %s512_s30 = smul.u32 6, %s149_s29  ;;  %p835_p0 = pnand %p533_p13, %p808_p4 }
  0x17   : > { %s997_s28 = scalar_select %p825_p11, 1, 0 }
  0x18   : > { %s513_s4 = smul.u32 96, %s730_s18  ;;  %s153_s9 = scalar_lea.vmem [#allocation4], %s512_s30 }
  0x19   : > { %s162_s10 = sshll.u32 %s153_s9, 4  ;;  %s847_s11 = scalar_lea.sflag [#allocation5], %s149_s29  ;;  %s844_s10 = int_to_ptr.vmem [resolvable:$true] %s162_s10 }
  0x1a   : > { %s842_s8 = scalar_lea.hbm %s990_s1, %s513_s4  ;;  %p592_p3 = pneg %p835_p0 }
  0x1b   : > { %s590_s12 = scalar_lea.hbm %s842_s8, 96  ;;  %s595_s20 = scalar_lea.hbm %s990_s1, 192 }
  0x1c   : > { %p591_p2 = scmp.ne.s32.totalorder %s842_s8, %s590_s12  ;;  %p596_p6 = scmp.lt.u32.totalorder %s842_s8, %s990_s1 }
  0x1d   : > { %p597_p7 = scmp.lt.u32.totalorder %s595_s20, %s590_s12  ;;  %p599_p13 = scmp.lt.u32.totalorder %s590_s12, %s842_s8 }
  0x1e   : > { %p593_p4 = pnand %p592_p3, %p591_p2 }
  0x1f   : > { %p598_p10 = por %p597_p7, %p596_p6 }
  0x20   : > { %p594_p5 = pneg %p593_p4 }
  0x21   : > { %p600_p12 = por %p599_p13, %p598_p10 }
  0x23   : > { %p601_p1 = pnand %p600_p12, %p594_p5 }
  0x25   : > { %604 = shalt.err (!%p601_p1)
}
  0x26   : > { %s605_s24 = scalar_lea.vmem %s844_s10, 96  ;;  %s736_s29 = smov [#allocation4]  }
  0x27   : > { %p606_p2 = scmp.ne.s32.totalorder %s844_s10, %s605_s24  ;;  %s610_s30 = sshll.u32 %s736_s29, 4  ;;  %s611_s30 = int_to_ptr.vmem [resolvable:$false] %s610_s30 }
  0x28   : > { %s612_s4 = scalar_lea.vmem %s611_s30, 192  ;;  %p613_p9 = scmp.lt.s32.totalorder %s844_s10, %s611_s30 }
  0x29   : > { %p608_p4 = pnand %p606_p2, %p592_p3  ;;  %p614_p6 = scmp.lt.s32.totalorder %s612_s4, %s605_s24 }
  0x2b   : > { %p609_p11 = pneg %p608_p4  ;;  %p615_p7 = por %p614_p6, %p613_p9 }
  0x2d   : > { %p616_p10 = pnand %p615_p7, %p609_p11 }
  0x2f   : > { %619 = shalt.err (!%p616_p10)
}
  0x30   : > { %s737_s6 = smov 32   ;;  %s738_s7 = smov 2  }
  0x31   : > { %525 = dma.hbm_to_vmem [thread:$0]  (!%p835_p0), %s842_s8, 96, %s844_s10, %s847_s11, %s737_s6, %s737_s6, %s738_s7  }
  0x32   : > { %p170_p12 = scmp.lt.s32.totalorder %s734_s19, 3  ;;  %p999_p1 = scmp.ge.s32.totalorder %s734_s19, 1 }
  0x34   : > { %p171_p3 = pnand %p999_p1, %p170_p12 }
  0x35   : > { %s879_s9 = sand.u32 (!%p171_p3), 1, %s718_s15  }
  0x36   : > { %174 = sbr.rel (%p171_p3) target bundleno = 163 (0xa3), region = 24  ;;  %s177_s13 = scalar_lea.sflag (!%p171_p3), [#allocation5], %s879_s9 }
  0x37   : > { %s514_s12 = smul.u32 (!%p171_p3), 6, %s879_s9 }
  0x39   : > { %s885_s0 = scalar_lea.vmem (!%p171_p3), [#allocation4], %s514_s12 }
  0x3d   : > { %701 = dma.done.wait (%p814_p8), %s177_s13, 96  }
  0x3e   : > { %703 = vsyncadd (%p814_p8), %s177_s13, 4294967200  ;;  %v208_v0 = vlaneseq  ;;  %s892_s5 = scalar_lea.vmem [#allocation8], %s879_s9  ;;  %v739_v1 = vmov 0.0   ;;  %s214_s8 = sld [smem:[#allocation3]]  ;;  %v216_v48 = vld [vmem:[%s885_s0] sm:$0x3] }
  0x3f   : > { %317 = vst [vmem:[%s892_s5] sm:$0x1] %v739_v1  ;;  %s480_s10 = smul.u32 768, %s726_s17  ;;  %s198_s22 = scalar_lea.vmem [#allocation7], %s514_s12  ;;  %v486_v49 = vld [vmem:[%s885_s0 + $0x2] sm:$0x3] }
  0x40   : > { %v209_v2 = vshrl.u32 %v208_v0, 7  ;;  %v211_v3 = vand.u32 127, %v208_v0  ;;  %s341_s23 = sshll.u32 %s198_s22, 4  ;;  %s515_s24 = smul.u32 96, %s726_s17  ;;  %v494_v53 = vld [vmem:[%s885_s0 + $0x4] sm:$0x3]  ;;  %s902_s23 = int_to_ptr.vmem [resolvable:$true] %s341_s23 }
  0x41   : > { %s507_s11 = sadd.s32 256, %s480_s10  ;;  %s509_s20 = sadd.s32 512, %s480_s10  ;;  %v220_v5 = vstv %s480_s10 }
  0x42   : > { %v212_v4 = vmul.u32 128, %v209_v2  ;;  %v248_v6 = vstv %s507_s11  ;;  %v277_v7 = vstv %s509_s20  ;;  %s907_s4 = scalar_lea.hbm %s991_s2, %s515_s24  ;;  %s322_s6 = scalar_lea.sflag [#allocation6], %s879_s9 }
  0x43   : > { %s620_s7 = scalar_lea.vmem %s902_s23, 96  ;;  %p1000_p9 = scmp.ne.s32.totalorder %s996_s26, 0 }
  0x44   : > { %v213_v8 = vadd.s32 %v212_v4, %v211_v3  ;;  %s215_s25 = smul.u32 2654435769, %s214_s8  ;;  %p621_p8 = scmp.ne.s32.totalorder %s902_s23, %s620_s7 }
  0x45   : > { %s740_s12 = smov [#allocation7]  }
  0x46   : > { %v221_v9 = vadd.s32 %v220_v5, %v213_v8  ;;  %v249_v10 = vadd.s32 %v248_v6, %v213_v8  ;;  %v278_v11 = vadd.s32 %v277_v7, %v213_v8  ;;  %v222_v12 = vstv %s215_s25  ;;  %p622_p11 = pnand %p621_p8, %p1000_p9  ;;  %s624_s13 = sshll.u32 %s740_s12, 4  ;;  %s625_s13 = int_to_ptr.vmem [resolvable:$false] %s624_s13 }
  0x47   : > { %s626_s0 = scalar_lea.vmem %s625_s13, 192  ;;  %p627_p5 = scmp.lt.s32.totalorder %s902_s23, %s625_s13 }
  0x48   : > { %v223_v13 = vadd.s32 %v222_v12, %v221_v9  ;;  %v250_v14 = vadd.s32 %v249_v10, %v222_v12  ;;  %v279_v15 = vadd.s32 %v278_v11, %v222_v12  ;;  %p623_p0 = pneg %p622_p11  ;;  %p628_p13 = scmp.lt.s32.totalorder %s626_s0, %s620_s7 }
  0x4a   : > { %v481_v16 = vshrl.u32 %v223_v13, 16  ;;  %v488_v17 = vshrl.u32 %v250_v14, 16  ;;  %v496_v18 = vshrl.u32 %v279_v15, 16  ;;  %p629_p2 = por %p628_p13, %p627_p5 }
  0x4c   : > { %v226_v19 = vxor.u32 %v481_v16, %v223_v13  ;;  %v253_v20 = vxor.u32 %v488_v17, %v250_v14  ;;  %v282_v21 = vxor.u32 %v496_v18, %v279_v15  ;;  %p630_p4 = pnand %p629_p2, %p623_p0 }
  0x4e   : > { %v227_v22 = vmul.u32 2146121005, %v226_v19  ;;  %v254_v23 = vmul.u32 2146121005, %v253_v20 }
  0x4f   : > { %v283_v24 = vmul.u32 2146121005, %v282_v21 }
  0x50   : > { %v482_v25 = vshrl.u32 %v227_v22, 15  ;;  %v489_v26 = vshrl.u32 %v254_v23, 15 }
  0x51   : > { %v497_v27 = vshrl.u32 %v283_v24, 15 }
  0x52   : > { %v230_v28 = vxor.u32 %v482_v25, %v227_v22  ;;  %v257_v29 = vxor.u32 %v489_v26, %v254_v23 }
  0x53   : > { %v286_v30 = vxor.u32 %v497_v27, %v283_v24 }
  0x54   : > { %v231_v31 = vmul.u32 2221713035, %v230_v28  ;;  %v258_v32 = vmul.u32 2221713035, %v257_v29 }
  0x55   : > { %v287_v33 = vmul.u32 2221713035, %v286_v30 }
  0x56   : > { %v483_v34 = vshrl.u32 %v231_v31, 16  ;;  %v490_v35 = vshrl.u32 %v258_v32, 16 }
  0x57   : > { %v498_v36 = vshrl.u32 %v287_v33, 16 }
  0x58   : > { %v234_v37 = vxor.u32 %v483_v34, %v231_v31  ;;  %v261_v38 = vxor.u32 %v490_v35, %v258_v32 }
  0x59   : > { %v290_v39 = vxor.u32 %v498_v36, %v287_v33 }
  0x5a   : > { %v484_v40 = vshrl.u32 %v234_v37, 8  ;;  %v491_v41 = vshrl.u32 %v261_v38, 8 }
  0x5b   : > { %v499_v42 = vshrl.u32 %v290_v39, 8 }
  0x5c   : > { %v237_v43 = vcvt.s32.f32 %v484_v40  ;;  %v264_v44 = vcvt.s32.f32 %v491_v41 }
  0x5d   : > { %v293_v45 = vcvt.s32.f32 %v499_v42 }
  0x5e   : > { %v238_v46 = vmul.f32 2.3374372e-10, %v237_v43  ;;  %v265_v47 = vmul.f32 2.3374372e-10, %v264_v44 }
  0x5f   : > { %v294_v50 = vmul.f32 2.3374372e-10, %v293_v45 }
  0x60   : > { %v485_v51 = vadd.f32 -0.0019607844, %v238_v46  ;;  %v492_v52 = vadd.f32 -0.0019607844, %v265_v47 }
  0x61   : > { %v500_v54 = vadd.f32 -0.0019607844, %v294_v50 }
  0x62   : > { %v240_v55 = vadd.f32 %v485_v51, %v216_v48  ;;  %v267_v56 = vadd.f32 %v492_v52, %v486_v49 }
  0x63   : > { %v296_v57 = vadd.f32 %v500_v54, %v494_v53 }
  0x64   : > { %241 = vst [vmem:[%s198_s22] sm:$0x3] %v240_v55  ;;  %v242_v58 = vmul.f32 %v240_v55, %v240_v55  ;;  %493 = vst [vmem:[%s198_s22 + $0x2] sm:$0x3] %v267_v56  ;;  %v270_v59 = vmul.f32 %v267_v56, %v267_v56 }
  0x65   : > { %501 = vst [vmem:[%s198_s22 + $0x4] sm:$0x3] %v296_v57  ;;  %v299_v60 = vmul.f32 %v296_v57, %v296_v57 }
  0x66   : > { %v271_v61 = vadd.f32 %v270_v59, %v242_v58 }
  0x67   : > { %633 = shalt.err (!%p630_p4)
}
  0x68   : > { %s634_s8 = scalar_lea.hbm %s907_s4, 96  ;;  %s638_s20 = scalar_lea.hbm %s991_s2, 192 }
  0x69   : > { %p635_p6 = scmp.ne.s32.totalorder %s907_s4, %s634_s8  ;;  %p639_p12 = scmp.lt.u32.totalorder %s907_s4, %s991_s2 }
  0x6a   : > { %p640_p1 = scmp.lt.u32.totalorder %s638_s20, %s634_s8  ;;  %p642_p8 = scmp.lt.u32.totalorder %s634_s8, %s907_s4 }
  0x6b   : > { %p636_p7 = pnand %p635_p6, %p1000_p9 }
  0x6c   : > { %p641_p3 = por %p640_p1, %p639_p12 }
  0x6d   : > { %p637_p10 = pneg %p636_p7 }
  0x6e   : > { %p643_p11 = por %p642_p8, %p641_p3 }
  0x70   : > { %p644_p0 = pnand %p643_p11, %p637_p10 }
  0x72   : > { %647 = shalt.err (!%p644_p0)
}
  0x73   : > { %s741_s24 = smov 32   ;;  %s742_s29 = smov 2   ;;  %v300_v62 = vadd.f32 %v299_v60, %v271_v61  ;;  %vm305_vm0 = vcmask 1041408   ;;  %v318_v9 = vld [vmem:[%s892_s5] sm:$0x1] }
  0x74   : > { %518 = dma.vmem_to_hbm [thread:$0]  (%p1000_p9), %s902_s23, 96, %s907_s4, %s322_s6, %s741_s24, %s741_s24, %s742_s29  }
  0x75   : > { %v301_v63 = vmul.f32 0.05, %v300_v62  ;;  %s503_s30 = sshll.u32 %s726_s17, 4  ;;  %s358_s23 = sshll.u32 %s892_s5, 4  ;;  %s941_s23 = int_to_ptr.vmem [resolvable:$true] %s358_s23 }
  0x76   : > { %s939_s7 = scalar_lea.hbm %s992_s3, %s503_s30  ;;  %s327_s12 = scalar_lea.sflag [#allocation9], %s879_s9 }
  0x77   : > { %v302_v0 = vadd.f32 1.0, %v301_v63  ;;  %s648_s13 = scalar_lea.vmem %s941_s23, 16  ;;  %s743_s17 = smov [#allocation8]  }
  0x78   : > { %p649_p5 = scmp.ne.s32.totalorder %s941_s23, %s648_s13  ;;  %s652_s0 = sshll.u32 %s743_s17, 4  ;;  %s653_s0 = int_to_ptr.vmem [resolvable:$false] %s652_s0 }
  0x79   : > { %588 = vlog2.f32 %v302_v0  ;;  %s654_s8 = scalar_lea.vmem %s653_s0, 32  ;;  %p655_p4 = scmp.lt.s32.totalorder %s941_s23, %s653_s0 }
  0x7a   : > { %p650_p13 = pnand %p649_p5, %p1000_p9  ;;  %p656_p6 = scmp.lt.s32.totalorder %s654_s8, %s648_s13 }
  0x7c   : > { %p651_p2 = pneg %p650_p13  ;;  %p657_p7 = por %p656_p6, %p655_p4 }
  0x7e   : > { %p658_p10 = pnand %p657_p7, %p651_p2 }
  0x83   : > { %v589_v1 = vpop.eup %588 }
  0x84   : > { %v304_v2 = vmul.f32 0.6931472, %v589_v1 }
  0x86   : > { %v306_v3 = vsel %vm305_vm0, %v304_v2, 0.0 }
  0x87   : > { %v307_v4 = vrot.slane %v306_v3, 4 }
  0x89   : > { %v308_v5 = vadd.f32 %v307_v4, %v306_v3 }
  0x8b   : > { %v309_v6 = vrot.slane %v308_v5, 2 }
  0x8d   : > { %v310_v7 = vadd.f32 %v309_v6, %v308_v5 }
  0x8f   : > { %v311_v8 = vrot.slane %v310_v7, 1 }
  0x91   : > { %v312_v10 = vadd.f32 %v311_v8, %v310_v7 }
  0x93   : > { %v319_v11 = vadd.f32 %v318_v9, %v312_v10 }
  0x95   : > { %320 = vst [vmem:[%s892_s5] sm:$0x1] %v319_v11 }
  0x96   : > { %661 = shalt.err (!%p658_p10)
}
  0x97   : > { %s662_s9 = scalar_lea.hbm %s939_s7, 16  ;;  %s666_s11 = scalar_lea.hbm %s992_s3, 32 }
  0x98   : > { %p663_p12 = scmp.ne.s32.totalorder %s939_s7, %s662_s9  ;;  %p667_p8 = scmp.lt.u32.totalorder %s939_s7, %s992_s3 }
  0x99   : > { %p668_p11 = scmp.lt.u32.totalorder %s666_s11, %s662_s9  ;;  %p670_p5 = scmp.lt.u32.totalorder %s662_s9, %s939_s7 }
  0x9a   : > { %p664_p1 = pnand %p663_p12, %p1000_p9 }
  0x9b   : > { %p669_p0 = por %p668_p11, %p667_p8 }
  0x9c   : > { %p665_p3 = pneg %p664_p1 }
  0x9d   : > { %p671_p13 = por %p670_p5, %p669_p0 }
  0x9f   : > { %p672_p2 = pnand %p671_p13, %p665_p3 }
  0xa1   : > { %675 = shalt.err (!%p672_p2)
}
  0xa2   : > { %519 = dma.vmem_to_hbm [thread:$0]  (%p1000_p9), %s941_s23, 16, %s939_s7, %s327_s12  }
  0xa3 PF: > { %s370_s22 = sand.u32 1, %s714_s14   ;;  %p1001_p4 = scmp.ne.s32.totalorder %s997_s28, 0 }
  0xa4   : > { %p1002_p6 = scmp.ge.s32.totalorder %s734_s19, 2  ;;  %s371_s24 = scalar_lea.sflag [#allocation6], %s370_s22 }
  0xa6   : > { %p527_p7 = pnand %p1002_p6, %p1001_p4 }
  0xa8   : > { %705 = dma.done.wait (!%p527_p7), %s371_s24, 96  }
  0xa9   : > { %707 = vsyncadd (!%p527_p7), %s371_s24, 4294967200  ;;  %s380_s29 = scalar_lea.sflag [#allocation9], %s370_s22 }
  0xaa   : > { %709 = dma.done.wait (!%p527_p7), %s380_s29, 16  }
  0xab   : > { %711 = vsyncadd (!%p527_p7), %s380_s29, 4294967280  ;;  %s24_s19 = sadd.s32 1, %s734_s19   ;;  %s1003_s14 = smov %s718_s15 }
  0xac   : > { %p21_p10 = scmp.ge.s32.totalorder %s24_s19, 4   ;;  %s1004_s15 = smov %s722_s16 }
  0xad   : > { %s1005_s16 = smov %s823_s27  ;;  %s1006_s17 = smov %s730_s18 }
  0xae   : > { %s1007_s18 = smov %s1009_s21  ;;  %23 = sbr.rel (!%p21_p10) target bundleno = 10 (0xa), region = 94 }
  0xb5   :  { %384 = vsyncpa [#allocation5], 1 }
  0xb6   :  { %386 = vsyncpa [#allocation5 + $0x1], 1 }
  0xb7   :  { %387 = vsyncpa [#allocation6], 1 }
  0xb8   :  { %389 = vsyncpa [#allocation6 + $0x1], 1 }
  0xb9   :  { %390 = vsyncpa [#allocation9], 1 }
  0xba   :  { %392 = vsyncpa [#allocation9 + $0x1], 1 }

</bundles_post_ra>
